<compile_context>
chip_gen: v5e
topology: v5e:2x2
jax: 0.10.0
libtpu: 0.0.40
codegen_flags: <defaults>
</compile_context>

<pallas_src>
import jax
import jax.numpy as jnp
from jax import lax
from jax.experimental import pallas as pl
from jax.experimental.pallas import tpu as pltpu


_MATMUL_DTYPE = jnp.bfloat16          # MXU operand dtype; accumulation is f32

_COMPILER_PARAMS = pltpu.CompilerParams(
    dimension_semantics=("parallel",),          # batch-group axis -> both TCs
    vmem_limit_bytes=32 * 1024 * 1024)


# ----------------------------------------------------------------------------
# Parameter preparation (wrapper-side, cheap): BN folding + banded conv weights
# ----------------------------------------------------------------------------
def _fold_bn_affine(p, eps):
    """Fold conv bias + BatchNorm (running stats): y = conv*scale + bias_eff."""
    scale = p["gamma"] / jnp.sqrt(p["var"] + eps)
    bias_eff = (p["b"] - p["mean"]) * scale + p["beta"]
    return scale, bias_eff


def _banded_conv_weights(w_hwio, width):
    """(3,3,cin,cout) conv kernel -> (3, width*cin, width*cout) banded matrices.

    For row vectors xrow[h'][wi*cin+i] = x[h', wi, i], the SAME conv is
        out[h] = x[h-1] @ B[0] + x[h] @ B[1] + x[h+1] @ B[2]
    with B[ky][wi*cin+i, wo*cout+o] = w[ky, wi-wo+1, i, o] (0 outside band),
    i.e. horizontal zero-padding is folded into the band structure.
    """
    _, _, cin, cout = w_hwio.shape
    wi = jnp.arange(width)[:, None]
    wo = jnp.arange(width)[None, :]
    kx = wi - wo + 1                                    # (Wi, Wo)
    valid = (kx >= 0) & (kx <= 2)
    g = w_hwio[:, jnp.clip(kx, 0, 2), :, :]             # (3, Wi, Wo, cin, cout)
    g = g * valid[None, :, :, None, None].astype(w_hwio.dtype)
    g = jnp.transpose(g, (0, 1, 3, 2, 4))               # (3, Wi, cin, Wo, cout)
    return g.reshape(3, width * cin, width * cout)


def _prep_stage(p, width, eps):
    """conv-bn stage -> (tap-stacked, BN-scale-folded bf16 weights, bias row)."""
    scale, bias_eff = _fold_bn_affine(p, eps)
    cout = p["w"].shape[-1]
    w_scaled = p["w"].astype(jnp.float32) * scale[None, None, None, :]
    wb = _banded_conv_weights(w_scaled, width)           # (3, K, N)
    k = wb.shape[1]
    w_stack = wb.reshape(3 * k, width * cout).astype(_MATMUL_DTYPE)
    t_row = jnp.tile(bias_eff, width).reshape(1, width * cout).astype(jnp.float32)
    return w_stack, t_row


def _prep_conv3(p, width, cb, eps):
    """conv3 stage split over the concat's two channel halves, tap-stacked."""
    scale, bias_eff = _fold_bn_affine(p, eps)
    cout = p["w"].shape[-1]
    w_scaled = p["w"].astype(jnp.float32) * scale[None, None, None, :]
    wa = _banded_conv_weights(w_scaled[:, :, :cb, :], width)   # (3, lw, N)
    wb = _banded_conv_weights(w_scaled[:, :, cb:, :], width)   # (3, lw, N)
    wcat = jnp.concatenate([wa, wb], axis=1)                   # (3, 2*lw, N)
    k2 = wcat.shape[1]
    w_stack = wcat.reshape(3 * k2, width * cout).astype(_MATMUL_DTYPE)
    t_row = jnp.tile(bias_eff, width).reshape(1, width * cout).astype(jnp.float32)
    return w_stack, t_row


# ----------------------------------------------------------------------------
# Pallas kernels
# ----------------------------------------------------------------------------
def _edge_masks(bb, h, k):
    """Per-image top/bottom row masks for the batch-stacked (bb*h, k) value."""
    r = lax.broadcasted_iota(jnp.int32, (bb, h, k), 1).reshape(bb * h, k)
    return r == 0, r == h - 1


def _conv_stage(x, w_ref, masks):
    """3x3 SAME conv as ONE matmul: LHS = [x_up | x | x_dn] vs tap-stacked W.

    x: (bb*h, k) f32, batch-stacked image rows.  Vertical zero padding and
    cross-image isolation are handled by masking the rolled neighbours.
    """
    top, bot = masks
    rows = x.shape[0]
    x_up = jnp.where(top, 0.0, pltpu.roll(x, 1, axis=0))          # x[r-1]
    x_dn = jnp.where(bot, 0.0, pltpu.roll(x, rows - 1, axis=0))   # x[r+1]
    lhs = jnp.concatenate([x_up, x, x_dn], axis=-1).astype(_MATMUL_DTYPE)
    return jnp.dot(lhs, w_ref[...], preferred_element_type=jnp.float32)


def _swish(y):
    return y * jax.nn.sigmoid(y)          # sigmoid -> EUP slot


def _branch2_concat_kernel(x1_ref, x2_ref, w1_ref, t1_ref, w2_ref, t2_ref,
                           o_ref):
    """branch2 (2x conv-bn-swish) on x2; writes lane-concat [x1 | branch2(x2)]."""
    bb, h, lw = x2_ref.shape
    rows = bb * h
    m = _edge_masks(bb, h, lw)

    x2 = x2_ref[...].reshape(rows, lw).astype(jnp.float32)
    y = _swish(_conv_stage(x2, w1_ref, m) + t1_ref[...])
    y = _swish(_conv_stage(y, w2_ref, m) + t2_ref[...])

    x1 = x1_ref[...].reshape(rows, lw).astype(jnp.float32)
    out = jnp.concatenate([x1, y], axis=-1)            # (rows, 2*lw)
    o_ref[...] = out.reshape(bb, h, 2 * lw).astype(o_ref.dtype)


def _branch2_conv3_kernel(x1_ref, x2_ref, w1_ref, t1_ref, w2_ref, t2_ref,
                          w3_ref, t3_ref, o_ref):
    """branch2 + concat + conv3 block (conv linearity over channel halves)."""
    bb, h, lw = x2_ref.shape
    rows = bb * h
    n3 = o_ref.shape[-1]
    m1 = _edge_masks(bb, h, lw)

    x2 = x2_ref[...].reshape(rows, lw).astype(jnp.float32)
    y = _swish(_conv_stage(x2, w1_ref, m1) + t1_ref[...])
    y = _swish(_conv_stage(y, w2_ref, m1) + t2_ref[...])

    x1 = x1_ref[...].reshape(rows, lw).astype(jnp.float32)
    xc = jnp.concatenate([x1, y], axis=-1)              # (rows, 2*lw)
    m3 = _edge_masks(bb, h, 2 * lw)
    out = _swish(_conv_stage(xc, w3_ref, m3) + t3_ref[...])
    o_ref[...] = out.reshape(bb, h, n3).astype(o_ref.dtype)


# ----------------------------------------------------------------------------
# resunit forward (public interface in NCHW, like the PyTorch module)
# ----------------------------------------------------------------------------
def channel_shuffle_nchw(x, groups):
    b, c, h, w = x.shape
    cpg = c // groups
    x = x.reshape(b, groups, cpg, h, w)
    x = jnp.transpose(x, (0, 2, 1, 3, 4))
    return x.reshape(b, c, h, w)


def _to_rows(x_nchw_part):
    """(B, C, H, W) -> (B, H, W*C): NHWC with (W, C) collapsed into lanes."""
    b, c, h, w = x_nchw_part.shape
    return jnp.transpose(x_nchw_part, (0, 2, 3, 1)).reshape(b, h, w * c)


def _pick_block_batch(b, h, max_rows=512):
    """Images per grid step: stack batch for bigger M, keep grid >= 2 (v7x)."""
    best = 1
    for bb in range(1, b + 1):
        if b % bb != 0 or bb * h > max_rows:
            continue
        if b // bb >= 2 or b < 2:
            best = bb
    return best


def _full_spec(shape):
    nd = len(shape)
    return pl.BlockSpec(shape, lambda g, _nd=nd: (0,) * _nd)


def resunit_forward(x_nchw, params, direction, eps=1e-5):
    b, cin, h, w = x_nchw.shape
    cb = cin // 2
    lw = w * cb                                   # lane width of branch tensors
    bb = _pick_block_batch(b, h)
    grid = (b // bb,)

    x1_rows = _to_rows(x_nchw[:, :cb])
    x2_rows = _to_rows(x_nchw[:, cb:])

    w1, t1 = _prep_stage(params["branch2_0"], w, eps)
    w2, t2 = _prep_stage(params["branch2_1"], w, eps)

    x_spec = pl.BlockSpec((bb, h, lw), lambda g: (g, 0, 0))

    if direction == 1:
        p3 = params["conv3"]
        cout = p3["w"].shape[-1]
        n3 = w * cout
        w3, t3 = _prep_conv3(p3, w, cb, eps)

        out_rows = pl.pallas_call(
            _branch2_conv3_kernel,
            out_shape=jax.ShapeDtypeStruct((b, h, n3), x_nchw.dtype),
            grid=grid,
            in_specs=[x_spec, x_spec,
                      _full_spec(w1.shape), _full_spec(t1.shape),
                      _full_spec(w2.shape), _full_spec(t2.shape),
                      _full_spec(w3.shape), _full_spec(t3.shape)],
            out_specs=pl.BlockSpec((bb, h, n3), lambda g: (g, 0, 0)),
            compiler_params=_COMPILER_PARAMS,
        )(x1_rows, x2_rows, w1, t1, w2, t2, w3, t3)

        return jnp.transpose(out_rows.reshape(b, h, w, cout), (0, 3, 1, 2))

    # direction == 0 (channel shuffle) or any other value (plain concat):
    # kernel writes the lane-concatenated [x1 | branch2(x2)] block.
    out_rows = pl.pallas_call(
        _branch2_concat_kernel,
        out_shape=jax.ShapeDtypeStruct((b, h, 2 * lw), x_nchw.dtype),
        grid=grid,
        in_specs=[x_spec, x_spec,
                  _full_spec(w1.shape), _full_spec(t1.shape),
                  _full_spec(w2.shape), _full_spec(t2.shape)],
        out_specs=pl.BlockSpec((bb, h, 2 * lw), lambda g: (g, 0, 0)),
        compiler_params=_COMPILER_PARAMS,
    )(x1_rows, x2_rows, w1, t1, w2, t2)

    y5 = out_rows.reshape(b, h, 2, w, cb)         # (b, h, half, wi, c)
    if direction == 0:
        # concat + channel_shuffle(groups=2) + NHWC->NCHW as ONE transpose:
        # out channel = c*2 + half
        return jnp.transpose(y5, (0, 4, 2, 1, 3)).reshape(b, cin, h, w)
    # plain concat: out channel = half*cb + c
    return jnp.transpose(y5, (0, 2, 4, 1, 3)).reshape(b, cin, h, w)


# ----------------------------------------------------------------------------
# Pure-JAX reference (for correctness check)
# ----------------------------------------------------------------------------
def _ref_block(x_nchw, p, eps=1e-5):
    y = lax.conv_general_dilated(
        x_nchw, p["w"], (1, 1), "SAME",
        dimension_numbers=("NCHW", "HWIO", "NCHW"),
        precision=lax.Precision.HIGHEST)
    c = p["b"].shape[0]
    bc = lambda v: v.reshape(1, c, 1, 1)
    y = y + bc(p["b"])
    y = (y - bc(p["mean"])) / jnp.sqrt(bc(p["var"]) + eps) * bc(p["gamma"]) \
        + bc(p["beta"])
    return y * jax.nn.sigmoid(y)


def resunit_reference(x_nchw, params, direction):
    cb = x_nchw.shape[1] // 2
    x1, x2 = x_nchw[:, :cb], x_nchw[:, cb:]
    y = _ref_block(x2, params["branch2_0"])
    y = _ref_block(y, params["branch2_1"])
    out = jnp.concatenate([x1, y], axis=1)
    if direction == 0:
        out = channel_shuffle_nchw(out, 2)
    elif direction == 1:
        out = _ref_block(out, params["conv3"])
    return out


# ----------------------------------------------------------------------------
# Deterministic parameter init (shapes from resunit.__init__)
# ----------------------------------------------------------------------------
def make_conv_bn_params(key, cin, cout):
    k = jax.random.split(key, 6)
    return {
        "w": 0.1 * jax.random.normal(k[0], (3, 3, cin, cout), jnp.float32),
        "b": 0.1 * jax.random.normal(k[1], (cout,), jnp.float32),
        "gamma": 1.0 + 0.1 * jax.random.normal(k[2], (cout,), jnp.float32),
        "beta": 0.1 * jax.random.normal(k[3], (cout,), jnp.float32),
        "mean": 0.1 * jax.random.normal(k[4], (cout,), jnp.float32),
        "var": 1.0 + 0.5 * jax.random.uniform(k[5], (cout,), jnp.float32),
    }


def init_params(key, input_channels, output_channels):
    kb0, kb1, kc3 = jax.random.split(key, 3)
    cb = input_channels // 2
    return {
        "branch2_0": make_conv_bn_params(kb0, cb, cb),
        "branch2_1": make_conv_bn_params(kb1, cb, cb),
        "conv3": make_conv_bn_params(kc3, input_channels, output_channels),
    }


if __name__ == "__main__":
    B, Cin, Cout, H, W = 2, 4, 8, 16, 16

    key = jax.random.PRNGKey(0)
    kx, kp = jax.random.split(key)
    x = jax.random.normal(kx, (B, Cin, H, W), jnp.float32)
    params = init_params(kp, Cin, Cout)

    fwd = jax.jit(resunit_forward, static_argnames=("direction",))

    # direction = 1: split -> branch2 -> concat -> conv3 block (fully fused)
    out1 = jax.block_until_ready(fwd(x, params, direction=1))
    # direction = 0: split -> branch2 -> concat + channel_shuffle (fused concat)
    out0 = jax.block_until_ready(fwd(x, params, direction=0))

    assert out1.shape == (B, Cout, H, W), out1.shape
    assert out0.shape == (B, Cin, H, W), out0.shape

    ref1 = resunit_reference(x, params, 1)
    ref0 = resunit_reference(x, params, 0)
    # Tolerance accounts for bf16 MXU operands (reference runs at HIGHEST/f32).
    assert jnp.allclose(out1, ref1, rtol=3e-2, atol=3e-2), \
        float(jnp.max(jnp.abs(out1 - ref1)))
    assert jnp.allclose(out0, ref0, rtol=3e-2, atol=3e-2), \
        float(jnp.max(jnp.abs(out0 - ref0)))

    print("KERNEL_OK")
</pallas_src>

<mosaic_0001>
module attributes {stable_mosaic.version = 11 : i64} {
  func.func @_branch2_conv3_kernel(%arg0: i32, %arg1: memref<1x16x32xf32, #tpu.memory_space<vmem>>, %arg2: memref<1x16x32xf32, #tpu.memory_space<vmem>>, %arg3: memref<96x32xbf16, #tpu.memory_space<vmem>>, %arg4: memref<1x32xf32, #tpu.memory_space<vmem>>, %arg5: memref<96x32xbf16, #tpu.memory_space<vmem>>, %arg6: memref<1x32xf32, #tpu.memory_space<vmem>>, %arg7: memref<192x128xbf16, #tpu.memory_space<vmem>>, %arg8: memref<1x128xf32, #tpu.memory_space<vmem>>, %arg9: memref<1x16x128xf32, #tpu.memory_space<vmem>>) attributes {dimension_semantics = [#tpu.dimension_semantics<parallel>], iteration_bounds = array<i64: 2>, scalar_prefetch = 0 : i64, scratch_operands = 0 : i64, tpu.core_type = #tpu.core_type<tc>, window_params = [{transform_indices = @transform_0, window_bounds = array<i64: 1, 16, 32>}, {transform_indices = @transform_1, window_bounds = array<i64: 1, 16, 32>}, {pipeline_mode = #tpu.pipeline_mode<synchronous>, transform_indices = @transform_2, window_bounds = array<i64: 96, 32>}, {pipeline_mode = #tpu.pipeline_mode<synchronous>, transform_indices = @transform_3, window_bounds = array<i64: 1, 32>}, {pipeline_mode = #tpu.pipeline_mode<synchronous>, transform_indices = @transform_4, window_bounds = array<i64: 96, 32>}, {pipeline_mode = #tpu.pipeline_mode<synchronous>, transform_indices = @transform_5, window_bounds = array<i64: 1, 32>}, {pipeline_mode = #tpu.pipeline_mode<synchronous>, transform_indices = @transform_6, window_bounds = array<i64: 192, 128>}, {pipeline_mode = #tpu.pipeline_mode<synchronous>, transform_indices = @transform_7, window_bounds = array<i64: 1, 128>}, {transform_indices = @transform_8, window_bounds = array<i64: 1, 16, 128>}]} {
    %0 = tpu.iota {dimensions = array<i32: 1>} : vector<1x16x32xi32>
    %1 = vector.shape_cast %0 : vector<1x16x32xi32> to vector<16x32xi32>
    %c0_i32 = arith.constant 0 : i32
    %2 = vector.broadcast %c0_i32 : i32 to vector<16x32xi32>
    %3 = arith.cmpi eq, %1, %2 : vector<16x32xi32>
    %c15_i32 = arith.constant 15 : i32
    %4 = vector.broadcast %c15_i32 : i32 to vector<16x32xi32>
    %5 = arith.cmpi eq, %1, %4 : vector<16x32xi32>
    %c0 = arith.constant 0 : index
    %c0_0 = arith.constant 0 : index
    %c0_1 = arith.constant 0 : index
    %6 = vector.load %arg2[%c0, %c0_0, %c0_1] : memref<1x16x32xf32, #tpu.memory_space<vmem>>, vector<1x16x32xf32>
    %7 = vector.shape_cast %6 : vector<1x16x32xf32> to vector<16x32xf32>
    %c1_i32 = arith.constant 1 : i32
    %8 = tpu.dynamic_rotate %7 by %c1_i32 dim 0 : vector<16x32xf32>, i32 -> vector<16x32xf32>
    %cst = arith.constant 0.000000e+00 : f32
    %9 = vector.broadcast %cst : f32 to vector<16x32xf32>
    %10 = arith.select %3, %9, %8 : vector<16x32xi1>, vector<16x32xf32>
    %c15_i32_2 = arith.constant 15 : i32
    %11 = tpu.dynamic_rotate %7 by %c15_i32_2 dim 0 : vector<16x32xf32>, i32 -> vector<16x32xf32>
    %cst_3 = arith.constant 0.000000e+00 : f32
    %12 = vector.broadcast %cst_3 : f32 to vector<16x32xf32>
    %13 = arith.select %5, %12, %11 : vector<16x32xi1>, vector<16x32xf32>
    %14 = tpu.concatenate %10, %7, %13 in 1 : vector<16x32xf32>, vector<16x32xf32>, vector<16x32xf32> -> vector<16x96xf32>
    %15 = arith.truncf %14 : vector<16x96xf32> to vector<16x96xbf16>
    %c0_4 = arith.constant 0 : index
    %c0_5 = arith.constant 0 : index
    %16 = vector.load %arg3[%c0_4, %c0_5] : memref<96x32xbf16, #tpu.memory_space<vmem>>, vector<96x32xbf16>
    %cst_6 = arith.constant dense<0.000000e+00> : vector<16x32xf32>
    %17 = tpu.matmul %15, %16, %cst_6 {dimension_numbers = #tpu.dot_dimension_numbers<[1], [0], [0], [1], [0, 0, 1, 1], [], []>} : vector<16x96xbf16>, vector<96x32xbf16>, vector<16x32xf32> -> vector<16x32xf32>
    %c0_7 = arith.constant 0 : index
    %c0_8 = arith.constant 0 : index
    %18 = vector.load %arg4[%c0_7, %c0_8] : memref<1x32xf32, #tpu.memory_space<vmem>>, vector<1x32xf32>
    %19 = vector.broadcast %18 : vector<1x32xf32> to vector<16x32xf32>
    %20 = arith.addf %17, %19 : vector<16x32xf32>
    %21 = arith.negf %20 : vector<16x32xf32>
    %22 = math.exp %21 : vector<16x32xf32>
    %cst_9 = arith.constant 1.000000e+00 : f32
    %23 = vector.broadcast %cst_9 : f32 to vector<16x32xf32>
    %24 = arith.addf %23, %22 : vector<16x32xf32>
    %25 = arith.divf %23, %24 : vector<16x32xf32>
    %26 = arith.mulf %20, %25 : vector<16x32xf32>
    %c1_i32_10 = arith.constant 1 : i32
    %27 = tpu.dynamic_rotate %26 by %c1_i32_10 dim 0 : vector<16x32xf32>, i32 -> vector<16x32xf32>
    %cst_11 = arith.constant 0.000000e+00 : f32
    %28 = vector.broadcast %cst_11 : f32 to vector<16x32xf32>
    %29 = arith.select %3, %28, %27 : vector<16x32xi1>, vector<16x32xf32>
    %c15_i32_12 = arith.constant 15 : i32
    %30 = tpu.dynamic_rotate %26 by %c15_i32_12 dim 0 : vector<16x32xf32>, i32 -> vector<16x32xf32>
    %cst_13 = arith.constant 0.000000e+00 : f32
    %31 = vector.broadcast %cst_13 : f32 to vector<16x32xf32>
    %32 = arith.select %5, %31, %30 : vector<16x32xi1>, vector<16x32xf32>
    %33 = tpu.concatenate %29, %26, %32 in 1 : vector<16x32xf32>, vector<16x32xf32>, vector<16x32xf32> -> vector<16x96xf32>
    %34 = arith.truncf %33 : vector<16x96xf32> to vector<16x96xbf16>
    %c0_14 = arith.constant 0 : index
    %c0_15 = arith.constant 0 : index
    %35 = vector.load %arg5[%c0_14, %c0_15] : memref<96x32xbf16, #tpu.memory_space<vmem>>, vector<96x32xbf16>
    %cst_16 = arith.constant dense<0.000000e+00> : vector<16x32xf32>
    %36 = tpu.matmul %34, %35, %cst_16 {dimension_numbers = #tpu.dot_dimension_numbers<[1], [0], [0], [1], [0, 0, 1, 1], [], []>} : vector<16x96xbf16>, vector<96x32xbf16>, vector<16x32xf32> -> vector<16x32xf32>
    %c0_17 = arith.constant 0 : index
    %c0_18 = arith.constant 0 : index
    %37 = vector.load %arg6[%c0_17, %c0_18] : memref<1x32xf32, #tpu.memory_space<vmem>>, vector<1x32xf32>
    %38 = vector.broadcast %37 : vector<1x32xf32> to vector<16x32xf32>
    %39 = arith.addf %36, %38 : vector<16x32xf32>
    %40 = arith.negf %39 : vector<16x32xf32>
    %41 = math.exp %40 : vector<16x32xf32>
    %cst_19 = arith.constant 1.000000e+00 : f32
    %42 = vector.broadcast %cst_19 : f32 to vector<16x32xf32>
    %43 = arith.addf %42, %41 : vector<16x32xf32>
    %44 = arith.divf %42, %43 : vector<16x32xf32>
    %45 = arith.mulf %39, %44 : vector<16x32xf32>
    %c0_20 = arith.constant 0 : index
    %c0_21 = arith.constant 0 : index
    %c0_22 = arith.constant 0 : index
    %46 = vector.load %arg1[%c0_20, %c0_21, %c0_22] : memref<1x16x32xf32, #tpu.memory_space<vmem>>, vector<1x16x32xf32>
    %47 = vector.shape_cast %46 : vector<1x16x32xf32> to vector<16x32xf32>
    %48 = tpu.concatenate %47, %45 in 1 : vector<16x32xf32>, vector<16x32xf32> -> vector<16x64xf32>
    %49 = tpu.iota {dimensions = array<i32: 1>} : vector<1x16x64xi32>
    %50 = vector.shape_cast %49 : vector<1x16x64xi32> to vector<16x64xi32>
    %c0_i32_23 = arith.constant 0 : i32
    %51 = vector.broadcast %c0_i32_23 : i32 to vector<16x64xi32>
    %52 = arith.cmpi eq, %50, %51 : vector<16x64xi32>
    %c15_i32_24 = arith.constant 15 : i32
    %53 = vector.broadcast %c15_i32_24 : i32 to vector<16x64xi32>
    %54 = arith.cmpi eq, %50, %53 : vector<16x64xi32>
    %c1_i32_25 = arith.constant 1 : i32
    %55 = tpu.dynamic_rotate %48 by %c1_i32_25 dim 0 : vector<16x64xf32>, i32 -> vector<16x64xf32>
    %cst_26 = arith.constant 0.000000e+00 : f32
    %56 = vector.broadcast %cst_26 : f32 to vector<16x64xf32>
    %57 = arith.select %52, %56, %55 : vector<16x64xi1>, vector<16x64xf32>
    %c15_i32_27 = arith.constant 15 : i32
    %58 = tpu.dynamic_rotate %48 by %c15_i32_27 dim 0 : vector<16x64xf32>, i32 -> vector<16x64xf32>
    %cst_28 = arith.constant 0.000000e+00 : f32
    %59 = vector.broadcast %cst_28 : f32 to vector<16x64xf32>
    %60 = arith.select %54, %59, %58 : vector<16x64xi1>, vector<16x64xf32>
    %61 = tpu.concatenate %57, %48, %60 in 1 : vector<16x64xf32>, vector<16x64xf32>, vector<16x64xf32> -> vector<16x192xf32>
    %62 = arith.truncf %61 : vector<16x192xf32> to vector<16x192xbf16>
    %c0_29 = arith.constant 0 : index
    %c0_30 = arith.constant 0 : index
    %63 = vector.load %arg7[%c0_29, %c0_30] : memref<192x128xbf16, #tpu.memory_space<vmem>>, vector<192x128xbf16>
    %cst_31 = arith.constant dense<0.000000e+00> : vector<16x128xf32>
    %64 = tpu.matmul %62, %63, %cst_31 {dimension_numbers = #tpu.dot_dimension_numbers<[1], [0], [0], [1], [0, 0, 1, 1], [], []>} : vector<16x192xbf16>, vector<192x128xbf16>, vector<16x128xf32> -> vector<16x128xf32>
    %c0_32 = arith.constant 0 : index
    %c0_33 = arith.constant 0 : index
    %65 = vector.load %arg8[%c0_32, %c0_33] : memref<1x128xf32, #tpu.memory_space<vmem>>, vector<1x128xf32>
    %66 = vector.broadcast %65 : vector<1x128xf32> to vector<16x128xf32>
    %67 = arith.addf %64, %66 : vector<16x128xf32>
    %68 = arith.negf %67 : vector<16x128xf32>
    %69 = math.exp %68 : vector<16x128xf32>
    %cst_34 = arith.constant 1.000000e+00 : f32
    %70 = vector.broadcast %cst_34 : f32 to vector<16x128xf32>
    %71 = arith.addf %70, %69 : vector<16x128xf32>
    %72 = arith.divf %70, %71 : vector<16x128xf32>
    %73 = arith.mulf %67, %72 : vector<16x128xf32>
    %74 = vector.shape_cast %73 : vector<16x128xf32> to vector<1x16x128xf32>
    %c0_35 = arith.constant 0 : index
    %c0_36 = arith.constant 0 : index
    %c0_37 = arith.constant 0 : index
    %75 = vector.load %arg9[%c0_35, %c0_36, %c0_37] : memref<1x16x128xf32, #tpu.memory_space<vmem>>, vector<1x16x128xf32>
    tpu.vector_store %arg9[%c0_35, %c0_36, %c0_37], %74 {strides = array<i32>} : memref<1x16x128xf32, #tpu.memory_space<vmem>>, vector<1x16x128xf32>,
    return
  }
  func.func @transform_0(%arg0: i32) -> (i32, i32, i32) {
    %c0_i32 = arith.constant 0 : i32
    %c0_i32_0 = arith.constant 0 : i32
    %c0_i32_1 = arith.constant 0 : i32
    return %arg0, %c0_i32, %c0_i32_0 : i32, i32, i32
  }
  func.func @transform_1(%arg0: i32) -> (i32, i32, i32) {
    %c0_i32 = arith.constant 0 : i32
    %c0_i32_0 = arith.constant 0 : i32
    %c0_i32_1 = arith.constant 0 : i32
    return %arg0, %c0_i32, %c0_i32_0 : i32, i32, i32
  }
  func.func @transform_2(%arg0: i32) -> (i32, i32) {
    %c0_i32 = arith.constant 0 : i32
    %c0_i32_0 = arith.constant 0 : i32
    %c0_i32_1 = arith.constant 0 : i32
    return %c0_i32, %c0_i32_0 : i32, i32
  }
  func.func @transform_3(%arg0: i32) -> (i32, i32) {
    %c0_i32 = arith.constant 0 : i32
    %c0_i32_0 = arith.constant 0 : i32
    %c0_i32_1 = arith.constant 0 : i32
    return %c0_i32, %c0_i32_0 : i32, i32
  }
  func.func @transform_4(%arg0: i32) -> (i32, i32) {
    %c0_i32 = arith.constant 0 : i32
    %c0_i32_0 = arith.constant 0 : i32
    %c0_i32_1 = arith.constant 0 : i32
    return %c0_i32, %c0_i32_0 : i32, i32
  }
  func.func @transform_5(%arg0: i32) -> (i32, i32) {
    %c0_i32 = arith.constant 0 : i32
    %c0_i32_0 = arith.constant 0 : i32
    %c0_i32_1 = arith.constant 0 : i32
    return %c0_i32, %c0_i32_0 : i32, i32
  }
  func.func @transform_6(%arg0: i32) -> (i32, i32) {
    %c0_i32 = arith.constant 0 : i32
    %c0_i32_0 = arith.constant 0 : i32
    %c0_i32_1 = arith.constant 0 : i32
    return %c0_i32, %c0_i32_0 : i32, i32
  }
  func.func @transform_7(%arg0: i32) -> (i32, i32) {
    %c0_i32 = arith.constant 0 : i32
    %c0_i32_0 = arith.constant 0 : i32
    %c0_i32_1 = arith.constant 0 : i32
    return %c0_i32, %c0_i32_0 : i32, i32
  }
  func.func @transform_8(%arg0: i32) -> (i32, i32, i32) {
    %c0_i32 = arith.constant 0 : i32
    %c0_i32_0 = arith.constant 0 : i32
    %c0_i32_1 = arith.constant 0 : i32
    return %arg0, %c0_i32, %c0_i32_0 : i32, i32, i32
  }
}

</mosaic_0001>

<bundles_post_ra>
// kernel: tile.18
= control target key start
LH: loop header
LB: loop body
LE: loop exit
PB: predicated region body
PF: predicated region fallthrough
CT: control target
= control target key end

     0   :  { %s28_s0 = inlined_call_operand.vmem [shape: f32[2], index: 0, kind: input, shape index: {}]   ;;  %s29_s1 = inlined_call_operand.vmem [shape: f32[16,2], index: 1, kind: output, shape index: {}]  }
   0x1   :  { %v4_v0 = vld [vmem:[%s28_s0] ss:$0 sm:$0xff] }
   0x2   :  { %5 = vst [vmem:[%s29_s1] sm:$0xff] %v4_v0 }
   0x3   :  { %8 = vst [vmem:[%s29_s1 + $0x8] sm:$0xff] %v4_v0 }

// kernel: tile.19
= control target key start
LH: loop header
LB: loop body
LE: loop exit
PB: predicated region body
PF: predicated region fallthrough
CT: control target
= control target key end

     0   :  { %s131_s10 = smov 30   ;;  %s132_s11 = smov 26   ;;  %vm3_vm0 = vcmask 15360   ;;  %vm9_vm1 = vcmask 261360   ;;  %vm15_vm2 = vcmask 244960   ;;  %vm21_vm3 = vcmask 228560   ;;  %s207_s0 = inlined_call_operand.vmem [shape: f32[16,2], index: 0, kind: input, shape index: {}]   ;;  %s208_s1 = inlined_call_operand.vmem [shape: f32[1,32], index: 1, kind: output, shape index: {}]  }
   0x1   :  { %v101_v0 = vld [vmem:[%s207_s0 + $0xf] sm:$0x1]   ;;  %v103_v1 = vld [vmem:[%s207_s0 + $0xd] sm:$0x1]   ;;  %v105_v2 = vld [vmem:[%s207_s0 + $0xb] sm:$0x1]  }
   0x2   :  { %7 = vrot.lane.b32.xlu0 %v101_v0, %s131_s10  ;;  %19 = vrot.lane.b32.xlu1 %v103_v1, %s132_s11  ;;  %s133_s14 = smov 22   ;;  %v102_v3 = vld [vmem:[%s207_s0 + $0xe] sm:$0x1]   ;;  %v104_v4 = vld [vmem:[%s207_s0 + $0xc] sm:$0x1]   ;;  %s134_s19 = smov 28  }
   0x3   :  { %31 = vrot.lane.b32.xlu2 %v105_v2, %s133_s14  ;;  %s135_s20 = smov 24   ;;  %v106_v5 = vld [vmem:[%s207_s0 + $0xa] sm:$0x1]   ;;  %s136_s23 = smov 20   ;;  %v107_v6 = vld [vmem:[%s207_s0 + $0x9] sm:$0x1]  }
   0x4   :  { %v108_v7 = vld [vmem:[%s207_s0 + $0x8] sm:$0x1]   ;;  %s137_s28 = smov 18   ;;  %s138_s29 = smov 16   ;;  %v109_v8 = vld [vmem:[%s207_s0 + $0x7] sm:$0x1]  }
   0x5   :  { %s139_s3 = smov 14   ;;  %v110_v9 = vld [vmem:[%s207_s0 + $0x6] sm:$0x1]   ;;  %v111_v10 = vld [vmem:[%s207_s0 + $0x5] sm:$0x1]   ;;  %s140_s8 = smov 12  }
   0x6   :  { %s141_s9 = smov 10   ;;  %v112_v11 = vld [vmem:[%s207_s0 + $0x4] sm:$0x1]   ;;  %s142_s12 = smov 8   ;;  %v113_v12 = vld [vmem:[%s207_s0 + $0x3] sm:$0x1]  }
   0x7   :  { %v114_v13 = vld [vmem:[%s207_s0 + $0x2] sm:$0x1]   ;;  %s143_s17 = smov 6   ;;  %s144_s18 = smov 4   ;;  %v115_v14 = vld [vmem:[%s207_s0 + $0x1] sm:$0x1]  }
   0x8   :  { %s145_s21 = smov 2   ;;  %v2_v15 = vld [vmem:[%s207_s0] sm:$0x1]   ;;  %vm27_vm4 = vcmask 212160   ;;  %vm33_vm5 = vcmask 195760   ;;  %vm39_vm6 = vcmask 179360  }
   0x9   :  { %4 = vst.msk [vmem:[#allocation0] sm:$0x1] %vm3_vm0, %v2_v15   ;;  %vm45_vm7 = vcmask 162960   ;;  %vm51_vm8 = vcmask 146560   ;;  %vm57_vm9 = vcmask 130160   ;;  %vm63_vm10 = vcmask 113760  }
   0xa   :  { %13 = vrot.lane.b32.xlu0 %v102_v3, %s134_s19  ;;  %25 = vrot.lane.b32.xlu1 %v104_v4, %s135_s20  ;;  %vm69_vm11 = vcmask 97360   ;;  %vm75_vm12 = vcmask 80960   ;;  %vm81_vm13 = vcmask 64560   ;;  %vm87_vm14 = vcmask 48160  }
   0xb   :  { %37 = vrot.lane.b32.xlu2 %v106_v5, %s136_s23  ;;  %vm93_vm15 = vcmask 31760  }
  0x12   :  { %43 = vrot.lane.b32.xlu0 %v107_v6, %s137_s28  ;;  %49 = vrot.lane.b32.xlu1 %v108_v7, %s138_s29 }
  0x13   :  { %55 = vrot.lane.b32.xlu2 %v109_v8, %s139_s3 }
  0x1a   :  { %61 = vrot.lane.b32.xlu0 %v110_v9, %s140_s8  ;;  %67 = vrot.lane.b32.xlu1 %v111_v10, %s141_s9 }
  0x1b   :  { %73 = vrot.lane.b32.xlu2 %v112_v11, %s142_s12 }
  0x22   :  { %79 = vrot.lane.b32.xlu0 %v113_v12, %s143_s17  ;;  %85 = vrot.lane.b32.xlu1 %v114_v13, %s144_s18 }
  0x23   :  { %91 = vrot.lane.b32.xlu2 %v115_v14, %s145_s21 }
  0x5d   :  { %v32_v16 = vpop.permute.xlu2 %31  }
  0x65   :  { %v38_v17 = vpop.permute.xlu2 %37  }
  0x6d   :  { %v56_v18 = vpop.permute.xlu2 %55  }
  0x74   :  { %v8_v19 = vpop.permute.xlu0 %7   ;;  %v20_v20 = vpop.permute.xlu1 %19  }
  0x75   :  { %10 = vst.msk [vmem:[#allocation0] sm:$0x1] %vm9_vm1, %v8_v19   ;;  %v74_v21 = vpop.permute.xlu2 %73  }
  0x7c   :  { %v14_v22 = vpop.permute.xlu0 %13   ;;  %v26_v23 = vpop.permute.xlu1 %25  }
  0x7d   :  { %16 = vst.msk [vmem:[#allocation0] sm:$0x1] %vm15_vm2, %v14_v22   ;;  %v92_v24 = vpop.permute.xlu2 %91  }
  0x7e   :  { %22 = vst.msk [vmem:[#allocation0] sm:$0x1] %vm21_vm3, %v20_v20  }
  0x7f   :  { %28 = vst.msk [vmem:[#allocation0] sm:$0x1] %vm27_vm4, %v26_v23  }
  0x80   :  { %34 = vst.msk [vmem:[#allocation0] sm:$0x1] %vm33_vm5, %v32_v16  }
  0x81   :  { %40 = vst.msk [vmem:[#allocation0] sm:$0x1] %vm39_vm6, %v38_v17  }
  0x84   :  { %v44_v25 = vpop.permute.xlu0 %43   ;;  %v50_v26 = vpop.permute.xlu1 %49  }
  0x85   :  { %46 = vst.msk [vmem:[#allocation0] sm:$0x1] %vm45_vm7, %v44_v25  }
  0x86   :  { %52 = vst.msk [vmem:[#allocation0] sm:$0x1] %vm51_vm8, %v50_v26  }
  0x87   :  { %58 = vst.msk [vmem:[#allocation0] sm:$0x1] %vm57_vm9, %v56_v18  }
  0x8c   :  { %v62_v27 = vpop.permute.xlu0 %61   ;;  %v68_v28 = vpop.permute.xlu1 %67  }
  0x8d   :  { %64 = vst.msk [vmem:[#allocation0] sm:$0x1] %vm63_vm10, %v62_v27  }
  0x8e   :  { %70 = vst.msk [vmem:[#allocation0] sm:$0x1] %vm69_vm11, %v68_v28  }
  0x8f   :  { %76 = vst.msk [vmem:[#allocation0] sm:$0x1] %vm75_vm12, %v74_v21  }
  0x94   :  { %v80_v29 = vpop.permute.xlu0 %79   ;;  %v86_v30 = vpop.permute.xlu1 %85  }
  0x95   :  { %82 = vst.msk [vmem:[#allocation0] sm:$0x1] %vm81_vm13, %v80_v29  }
  0x96   :  { %88 = vst.msk [vmem:[#allocation0] sm:$0x1] %vm87_vm14, %v86_v30  }
  0x97   :  { %94 = vst.msk [vmem:[#allocation0] sm:$0x1] %vm93_vm15, %v92_v24  }
  0x9e   :  { %v97_v31 = vld [vmem:[#allocation0] sm:$0x1] }
  0x9f   :  { %100 = vst [vmem:[%s208_s1] sm:$0x1] %v97_v31 }

// kernel: tile.28
= control target key start
LH: loop header
LB: loop body
LE: loop exit
PB: predicated region body
PF: predicated region fallthrough
CT: control target
= control target key end

     0   :  { %s28_s0 = inlined_call_operand.vmem [shape: f32[8], index: 0, kind: input, shape index: {}]   ;;  %s29_s1 = inlined_call_operand.vmem [shape: f32[16,8], index: 1, kind: output, shape index: {}]  }
   0x1   :  { %v4_v0 = vld [vmem:[%s28_s0] ss:$0 sm:$0xff] }
   0x2   :  { %5 = vst [vmem:[%s29_s1] sm:$0xff] %v4_v0 }
   0x3   :  { %8 = vst [vmem:[%s29_s1 + $0x8] sm:$0xff] %v4_v0 }

// kernel: tile.29
= control target key start
LH: loop header
LB: loop body
LE: loop exit
PB: predicated region body
PF: predicated region fallthrough
CT: control target
= control target key end

     0   :  { %s131_s10 = smov 120   ;;  %s132_s11 = smov 104   ;;  %vm3_vm0 = vcmask 64512   ;;  %vm9_vm1 = vcmask 1048512   ;;  %vm15_vm2 = vcmask 982912   ;;  %vm21_vm3 = vcmask 917312   ;;  %s207_s0 = inlined_call_operand.vmem [shape: f32[16,8], index: 0, kind: input, shape index: {}]   ;;  %s208_s1 = inlined_call_operand.vmem [shape: f32[1,128], index: 1, kind: output, shape index: {}]  }
   0x1   :  { %v101_v0 = vld [vmem:[%s207_s0 + $0xf] sm:$0x1]   ;;  %v103_v1 = vld [vmem:[%s207_s0 + $0xd] sm:$0x1]   ;;  %v105_v2 = vld [vmem:[%s207_s0 + $0xb] sm:$0x1]  }
   0x2   :  { %7 = vrot.lane.b32.xlu0 %v101_v0, %s131_s10  ;;  %19 = vrot.lane.b32.xlu1 %v103_v1, %s132_s11  ;;  %s133_s14 = smov 88   ;;  %v102_v3 = vld [vmem:[%s207_s0 + $0xe] sm:$0x1]   ;;  %v104_v4 = vld [vmem:[%s207_s0 + $0xc] sm:$0x1]   ;;  %s134_s19 = smov 112  }
   0x3   :  { %31 = vrot.lane.b32.xlu2 %v105_v2, %s133_s14  ;;  %s135_s20 = smov 96   ;;  %v106_v5 = vld [vmem:[%s207_s0 + $0xa] sm:$0x1]   ;;  %s136_s23 = smov 80   ;;  %v107_v6 = vld [vmem:[%s207_s0 + $0x9] sm:$0x1]  }
   0x4   :  { %v108_v7 = vld [vmem:[%s207_s0 + $0x8] sm:$0x1]   ;;  %s137_s28 = smov 72   ;;  %s138_s29 = smov 64   ;;  %v109_v8 = vld [vmem:[%s207_s0 + $0x7] sm:$0x1]  }
   0x5   :  { %s139_s3 = smov 56   ;;  %v110_v9 = vld [vmem:[%s207_s0 + $0x6] sm:$0x1]   ;;  %v111_v10 = vld [vmem:[%s207_s0 + $0x5] sm:$0x1]   ;;  %s140_s8 = smov 48  }
   0x6   :  { %s141_s9 = smov 40   ;;  %v112_v11 = vld [vmem:[%s207_s0 + $0x4] sm:$0x1]   ;;  %s142_s12 = smov 32   ;;  %v113_v12 = vld [vmem:[%s207_s0 + $0x3] sm:$0x1]  }
   0x7   :  { %v114_v13 = vld [vmem:[%s207_s0 + $0x2] sm:$0x1]   ;;  %s143_s17 = smov 24   ;;  %s144_s18 = smov 16   ;;  %v115_v14 = vld [vmem:[%s207_s0 + $0x1] sm:$0x1]  }
   0x8   :  { %s145_s21 = smov 8   ;;  %v2_v15 = vld [vmem:[%s207_s0] sm:$0x1]   ;;  %vm27_vm4 = vcmask 851712   ;;  %vm33_vm5 = vcmask 786112   ;;  %vm39_vm6 = vcmask 720512  }
   0x9   :  { %4 = vst.msk [vmem:[#allocation0] sm:$0x1] %vm3_vm0, %v2_v15   ;;  %vm45_vm7 = vcmask 654912   ;;  %vm51_vm8 = vcmask 589312   ;;  %vm57_vm9 = vcmask 523712   ;;  %vm63_vm10 = vcmask 458112  }
   0xa   :  { %13 = vrot.lane.b32.xlu0 %v102_v3, %s134_s19  ;;  %25 = vrot.lane.b32.xlu1 %v104_v4, %s135_s20  ;;  %vm69_vm11 = vcmask 392512   ;;  %vm75_vm12 = vcmask 326912   ;;  %vm81_vm13 = vcmask 261312   ;;  %vm87_vm14 = vcmask 195712  }
   0xb   :  { %37 = vrot.lane.b32.xlu2 %v106_v5, %s136_s23  ;;  %vm93_vm15 = vcmask 130112  }
  0x12   :  { %43 = vrot.lane.b32.xlu0 %v107_v6, %s137_s28  ;;  %49 = vrot.lane.b32.xlu1 %v108_v7, %s138_s29 }
  0x13   :  { %55 = vrot.lane.b32.xlu2 %v109_v8, %s139_s3 }
  0x1a   :  { %61 = vrot.lane.b32.xlu0 %v110_v9, %s140_s8  ;;  %67 = vrot.lane.b32.xlu1 %v111_v10, %s141_s9 }
  0x1b   :  { %73 = vrot.lane.b32.xlu2 %v112_v11, %s142_s12 }
  0x22   :  { %79 = vrot.lane.b32.xlu0 %v113_v12, %s143_s17  ;;  %85 = vrot.lane.b32.xlu1 %v114_v13, %s144_s18 }
  0x23   :  { %91 = vrot.lane.b32.xlu2 %v115_v14, %s145_s21 }
  0x5d   :  { %v32_v16 = vpop.permute.xlu2 %31  }
  0x65   :  { %v38_v17 = vpop.permute.xlu2 %37  }
  0x6d   :  { %v56_v18 = vpop.permute.xlu2 %55  }
  0x74   :  { %v8_v19 = vpop.permute.xlu0 %7   ;;  %v20_v20 = vpop.permute.xlu1 %19  }
  0x75   :  { %10 = vst.msk [vmem:[#allocation0] sm:$0x1] %vm9_vm1, %v8_v19   ;;  %v74_v21 = vpop.permute.xlu2 %73  }
  0x7c   :  { %v14_v22 = vpop.permute.xlu0 %13   ;;  %v26_v23 = vpop.permute.xlu1 %25  }
  0x7d   :  { %16 = vst.msk [vmem:[#allocation0] sm:$0x1] %vm15_vm2, %v14_v22   ;;  %v92_v24 = vpop.permute.xlu2 %91  }
  0x7e   :  { %22 = vst.msk [vmem:[#allocation0] sm:$0x1] %vm21_vm3, %v20_v20  }
  0x7f   :  { %28 = vst.msk [vmem:[#allocation0] sm:$0x1] %vm27_vm4, %v26_v23  }
  0x80   :  { %34 = vst.msk [vmem:[#allocation0] sm:$0x1] %vm33_vm5, %v32_v16  }
  0x81   :  { %40 = vst.msk [vmem:[#allocation0] sm:$0x1] %vm39_vm6, %v38_v17  }
  0x84   :  { %v44_v25 = vpop.permute.xlu0 %43   ;;  %v50_v26 = vpop.permute.xlu1 %49  }
  0x85   :  { %46 = vst.msk [vmem:[#allocation0] sm:$0x1] %vm45_vm7, %v44_v25  }
  0x86   :  { %52 = vst.msk [vmem:[#allocation0] sm:$0x1] %vm51_vm8, %v50_v26  }
  0x87   :  { %58 = vst.msk [vmem:[#allocation0] sm:$0x1] %vm57_vm9, %v56_v18  }
  0x8c   :  { %v62_v27 = vpop.permute.xlu0 %61   ;;  %v68_v28 = vpop.permute.xlu1 %67  }
  0x8d   :  { %64 = vst.msk [vmem:[#allocation0] sm:$0x1] %vm63_vm10, %v62_v27  }
  0x8e   :  { %70 = vst.msk [vmem:[#allocation0] sm:$0x1] %vm69_vm11, %v68_v28  }
  0x8f   :  { %76 = vst.msk [vmem:[#allocation0] sm:$0x1] %vm75_vm12, %v74_v21  }
  0x94   :  { %v80_v29 = vpop.permute.xlu0 %79   ;;  %v86_v30 = vpop.permute.xlu1 %85  }
  0x95   :  { %82 = vst.msk [vmem:[#allocation0] sm:$0x1] %vm81_vm13, %v80_v29  }
  0x96   :  { %88 = vst.msk [vmem:[#allocation0] sm:$0x1] %vm87_vm14, %v86_v30  }
  0x97   :  { %94 = vst.msk [vmem:[#allocation0] sm:$0x1] %vm93_vm15, %v92_v24  }
  0x9e   :  { %v97_v31 = vld [vmem:[#allocation0] sm:$0x1] }
  0x9f   :  { %100 = vst [vmem:[%s208_s1] sm:$0x1] %v97_v31 }

// kernel: resunit_forward.1
= control target key start
LH: loop header
LB: loop body
LE: loop exit
PB: predicated region body
PF: predicated region fallthrough
CT: control target
= control target key end

     0   :  { %s1168_s27 = smov 0   ;;  %s1340_s0 = inlined_call_operand.vmem [shape: f32[2,16,32], index: 0, kind: input, shape index: {}]   ;;  %s1341_s1 = inlined_call_operand.vmem [shape: f32[2,16,32], index: 1, kind: input, shape index: {}]   ;;  %s1342_s2 = inlined_call_operand.vmem [shape: bf16[96,32], index: 2, kind: input, shape index: {}]   ;;  %s1343_s3 = inlined_call_operand.vmem [shape: f32[1,32], index: 3, kind: input, shape index: {}]   ;;  %s1344_s4 = inlined_call_operand.vmem [shape: bf16[96,32], index: 4, kind: input, shape index: {}]   ;;  %s1345_s5 = inlined_call_operand.vmem [shape: f32[1,32], index: 5, kind: input, shape index: {}]   ;;  %s1346_s6 = inlined_call_operand.vmem [shape: bf16[192,128], index: 6, kind: input, shape index: {}]   ;;  %s1347_s7 = inlined_call_operand.vmem [shape: f32[1,128], index: 7, kind: input, shape index: {}]   ;;  %s1348_s8 = inlined_call_operand.vmem [shape: f32[2,16,128], index: 8, kind: output, shape index: {}]  }
   0x1 LB: > { %s901_s28 = sadd.s32 4294967295, %s1119_s27   ;;  %p905_p0 = scmp.ge.s32.totalorder %s1119_s27, 1  ;;  %s1119_s27 = sphi %s1168_s27, %s18_s27  }
   0x2   : > { %p272_p1 = scmp.lt.s32.totalorder %s1119_s27, 3 }
   0x4   : > { %p273_p2 = pnand %p905_p0, %p272_p1 }
   0x5   : > { %p311_p3 = scmp.lt.s32.totalorder (!%p273_p2), %s901_s28, 1  ;;  %s1121_s17 = smov (!%p273_p2), 32  }
   0x6   : > { %276 = sbr.rel (%p273_p2) target bundleno = 976 (0x3d0), region = 52  ;;  %s1122_s18 = smov (!%p273_p2), 64  }
   0xb   : > { %v327_v0 = vlaneseq  ;;  %v1027_v1 = vld [vmem:[%s1342_s2 + $0x28] sm:$0xff]  ;;  %s1350_s28 = smov (!%p311_p3, %s901_s28), 1  ;;  %v1026_v3 = vld [vmem:[%s1342_s2 + $0x20] sm:$0xff]  ;;  %v1025_v7 = vld [vmem:[%s1342_s2 + $0x18] sm:$0xff]  ;;  %vm366_vm4 = vcmask 261120   ;;  %vm369_vm5 = vcmask 523264  }
   0xc   : > { %431 = vmatpush.bf16.msra.mxu0 %v1027_v1  ;;  %s1184_s11 = sshll.u32 %s1350_s28, 4  ;;  %v1024_v19 = vld [vmem:[%s1342_s2 + $0x10] sm:$0xff]  ;;  %v1023_v20 = vld [vmem:[%s1342_s2 + $0x8] sm:$0xff]  ;;  %v1022_v21 = vld [vmem:[%s1342_s2] sm:$0xff]  ;;  %vm425_vm6 = vcmask 785408  }
   0xd   : > { %v1179_v2 = vshrl.u32 %v327_v0, 7  ;;  %s320_s14 = scalar_lea.vmem %s1341_s1, %s1184_s11  ;;  %v1086_v34 = vld [vmem:[%s1343_s3] ss:$0 sm:$0xff]  ;;  %v1033_v44 = vld [vmem:[%s1344_s4 + $0x28] sm:$0xff]  ;;  %v1031_v51 = vld [vmem:[%s1344_s4 + $0x18] sm:$0xff]  ;;  %s315_s24 = scalar_lea.vmem %s1340_s0, %s1184_s11 }
   0xe   : > { %v334_v5 = vld [vmem:[%s320_s14] sm:$0xff]  ;;  %v335_v6 = vld [vmem:[%s320_s14 + $0x8] sm:$0xff]  ;;  %573 = vmatpush.bf16.msra.mxu1 %v1033_v44  ;;  %v1044_v44 = vld [vmem:[%s1346_s6 + $0x50] sm:$0xff]  ;;  %s325_s14 = scalar_lea.vmem %s1348_s8, %s1184_s11 }
   0xf   : > { %v1187_v4 = vadd.s32 8, %v1179_v2  ;;  %v344_v8 = vrot.slane %v335_v6, 1  ;;  %v1056_v9 = vpack.i.bf16 %v335_v6, %v334_v5  ;;  %vm345_vm0 = vcmp.lt.s32.totalorder %v1179_v2, 7  ;;  %v1032_v48 = vld [vmem:[%s1344_s4 + $0x20] sm:$0xff] }
  0x10   : > { %432 = vmatpush.bf16.msra.mxu0 %v1026_v3  ;;  %v343_v10 = vrot.slane %v334_v5, 1  ;;  %v337_v15 = vrot.slane %v335_v6, 7  ;;  %v336_v16 = vrot.slane %v334_v5, 7  ;;  %vm338_vm2 = vcmp.lt.s32.totalorder %v1179_v2, 1 }
  0x11   : > { %vm333_vm1 = vcmp.eq.s32.totalorder %v1187_v4, 15  ;;  %1057 = vrot.lane.b32.xlu0 %v1056_v9, %s1121_s17  ;;  %vm330_vm3 = vcmp.eq.s32.totalorder %v1179_v2, 0 }
  0x12   : > { %v346_v11 = vsel %vm345_vm0, %v343_v10, %v344_v8  ;;  %v347_v12 = vsel %vm345_vm0, %v344_v8, %v343_v10  ;;  %v339_v17 = vsel %vm338_vm2, %v336_v16, %v337_v15  ;;  %v340_v18 = vsel %vm338_vm2, %v337_v15, %v336_v16  ;;  %574 = vmatpush.bf16.msra.mxu1 %v1032_v48 }
  0x13   : > { %v349_v13 = vsel %vm333_vm1, 0.0, %v347_v12  ;;  %v341_v25 = vsel %vm330_vm3, 0.0, %v340_v18 }
  0x14   : > { %433 = vmatpush.bf16.msra.mxu0 %v1025_v7  ;;  %v1061_v14 = vpack.i.bf16 %v349_v13, %v346_v11 }
  0x16   : > { %575 = vmatpush.bf16.msra.mxu1 %v1031_v51 }
  0x18   : > { %434 = vmatpush.bf16.msra.mxu0 %v1024_v19  ;;  %v1030_v19 = vld [vmem:[%s1344_s4 + $0x10] sm:$0xff] }
  0x19   : > { %1062 = vrot.lane.b32.xlu0 %v1061_v14, %s1122_s18 }
  0x1a   : > { %576 = vmatpush.bf16.msra.mxu1 %v1030_v19 }
  0x1c   : > { %435 = vmatpush.bf16.msra.mxu0 %v1023_v20  ;;  %v1029_v20 = vld [vmem:[%s1344_s4 + $0x8] sm:$0xff] }
  0x1e   : > { %577 = vmatpush.bf16.msra.mxu1 %v1029_v20 }
  0x20   : > { %436 = vmatpush.bf16.msra.mxu0 %v1022_v21  ;;  %v1028_v21 = vld [vmem:[%s1344_s4] sm:$0xff] }
  0x22   : > { %578 = vmatpush.bf16.msra.mxu1 %v1028_v21  ;;  %v1035_v21 = vld [vmem:[%s1346_s6 + $0x8] sm:$0xff] }
  0x83   : > { %v1058_v22 = vpop.permute.xlu0 %1057 }
  0x84   : > { %v1060_v23 = vunpack.i.h.bf16 %v1058_v22  ;;  %v1059_v24 = vunpack.i.l.bf16 %v1058_v22 }
  0x86   : > { %v367_v29 = vsel %vm366_vm4, %v341_v25, %v1059_v24  ;;  %v368_v30 = vsel %vm366_vm4, %v339_v17, %v1060_v23 }
  0x8b   : > { %v1063_v26 = vpop.permute.xlu0 %1062 }
  0x8c   : > { %v1065_v27 = vunpack.i.h.bf16 %v1063_v26  ;;  %v1064_v28 = vunpack.i.l.bf16 %v1063_v26 }
  0x8e   : > { %v370_v31 = vsel %vm369_vm5, %v367_v29, %v1064_v28  ;;  %v371_v32 = vsel %vm369_vm5, %v368_v30, %v1065_v27 }
  0x8f   : > { %v372_v33 = vpack.c.bf16 %v371_v32, %v370_v31 }
  0x91   : > { %936 = vmatmul.msk.bf16.vlgmr.msra.gmra.mxu0 %vm425_vm6, %v372_v33 }
 0x10e   : > { %v438_v35 = vpop.f32.mrf.mxu0 }
 0x10f   : > { %v439_v36 = vadd.f32 %v1086_v34, %v438_v35 }
 0x111   : > { %v937_v37 = vmul.f32 -1.442695, %v439_v36 }
 0x113   : > { %1089 = vpow2.f32 %v937_v37 }
 0x116   : > { %v440_v38 = vpop.f32.mrf.mxu0 }
 0x117   : > { %v441_v39 = vadd.f32 %v1086_v34, %v440_v38  ;;  %v1087_v34 = vld [vmem:[%s1345_s5] ss:$0 sm:$0xff] }
 0x119   : > { %v1090_v40 = vpop.eup %1089  ;;  %v938_v41 = vmul.f32 -1.442695, %v441_v39 }
 0x11a   : > { %v449_v42 = vadd.f32 1.0, %v1090_v40 }
 0x11b   : > { %1091 = vpow2.f32 %v938_v41 }
 0x11c   : > { %1093 = vrcp.f32 %v449_v42  ;;  %v462_v53 = vand.u32 2147483648, %v449_v42  ;;  %vm456_vm8 = vweird.f32 %v449_v42  ;;  %v460_v55 = vand.u32 2147483647, %v449_v42 }
 0x11e   : > { %v463_v58 = vor.u32 1.1754944e-38, %v462_v53  ;;  %vm461_vm10 = vcmp.eq.f32.partialorder %v460_v55, 8.507059e+37 }
 0x121   : > { %v1092_v43 = vpop.eup %1091 }
 0x122   : > { %v1094_v45 = vpop.eup %1093  ;;  %v450_v46 = vadd.f32 1.0, %v1092_v43 }
 0x123   : > { %v452_v47 = vmul.f32 %v1094_v45, %v449_v42  ;;  %vm457_vm7 = vweird.f32 %v1094_v45  ;;  %v1045_v42 = vld [vmem:[%s1346_s6 + $0x58] sm:$0xff] }
 0x124   : > { %1095 = vrcp.f32 %v450_v46  ;;  %vm458_vm9 = vmor %vm456_vm8, %vm457_vm7  ;;  %v477_v60 = vand.u32 2147483648, %v450_v46  ;;  %v475_v63 = vand.u32 2147483647, %v450_v46  ;;  %vm471_vm12 = vweird.f32 %v450_v46  ;;  %782 = vmatpush.bf16.msra.mxu3 %v1045_v42  ;;  %v1088_v42 = vld [vmem:[%s1347_s7] ss:$0 sm:$0xff] }
 0x125   : > { %v453_v49 = vsub.f32 1.0, %v452_v47 }
 0x126   : > { %v478_v3 = vor.u32 1.1754944e-38, %v477_v60  ;;  %vm476_vm14 = vcmp.eq.f32.partialorder %v475_v63, 8.507059e+37 }
 0x127   : > { %v454_v50 = vmul.f32 %v1094_v45, %v453_v49 }
 0x128   : > { %783 = vmatpush.bf16.msra.mxu3 %v1044_v44 }
 0x129   : > { %v455_v52 = vadd.f32 %v1094_v45, %v454_v50 }
 0x12a   : > { %v1096_v54 = vpop.eup %1095 }
 0x12b   : > { %v467_v56 = vmul.f32 %v1096_v54, %v450_v46  ;;  %v459_v57 = vsel %vm458_vm9, %v1094_v45, %v455_v52  ;;  %vm472_vm11 = vweird.f32 %v1096_v54 }
 0x12c   : > { %v464_v61 = vsel %vm461_vm10, %v463_v58, %v459_v57  ;;  %vm473_vm13 = vmor %vm471_vm12, %vm472_vm11 }
 0x12d   : > { %v468_v59 = vsub.f32 1.0, %v467_v56  ;;  %v481_v1 = vmul.f32 %v464_v61, %v439_v36 }
 0x12f   : > { %v469_v62 = vmul.f32 %v1096_v54, %v468_v59  ;;  %v483_v8 = vrot.slane %v481_v1, 7  ;;  %v489_v9 = vrot.slane %v481_v1, 1 }
 0x131   : > { %v470_v0 = vadd.f32 %v1096_v54, %v469_v62 }
 0x133   : > { %v474_v5 = vsel %vm473_vm13, %v1096_v54, %v470_v0 }
 0x134   : > { %v479_v6 = vsel %vm476_vm14, %v478_v3, %v474_v5 }
 0x135   : > { %v482_v7 = vmul.f32 %v479_v6, %v441_v39 }
 0x137   : > { %v484_v10 = vrot.slane %v482_v7, 7  ;;  %v490_v11 = vrot.slane %v482_v7, 1  ;;  %v1066_v12 = vpack.i.bf16 %v482_v7, %v481_v1 }
 0x139   : > { %1067 = vrot.lane.b32.xlu1 %v1066_v12, %s1121_s17  ;;  %v492_v13 = vsel %vm345_vm0, %v490_v11, %v489_v9  ;;  %v485_v14 = vsel %vm338_vm2, %v483_v8, %v484_v10  ;;  %v486_v15 = vsel %vm338_vm2, %v484_v10, %v483_v8  ;;  %v491_v16 = vsel %vm345_vm0, %v489_v9, %v490_v11  ;;  %v1043_v8 = vld [vmem:[%s1346_s6 + $0x48] sm:$0xff]  ;;  %v1042_v9 = vld [vmem:[%s1346_s6 + $0x40] sm:$0xff]  ;;  %v1041_v10 = vld [vmem:[%s1346_s6 + $0x38] sm:$0xff] }
 0x13a   : > { %v494_v17 = vsel %vm333_vm1, 0.0, %v492_v13  ;;  %v487_v26 = vsel %vm330_vm3, 0.0, %v486_v15  ;;  %784 = vmatpush.bf16.msra.mxu3 %v1043_v8  ;;  %764 = vmatpush.bf16.msra.mxu2 %v1041_v10  ;;  %v1040_v11 = vld [vmem:[%s1346_s6 + $0x30] sm:$0xff]  ;;  %v1039_v12 = vld [vmem:[%s1346_s6 + $0x28] sm:$0xff]  ;;  %v1038_v13 = vld [vmem:[%s1346_s6 + $0x20] sm:$0xff] }
 0x13b   : > { %v1071_v18 = vpack.i.bf16 %v494_v17, %v491_v16  ;;  %v1036_v15 = vld [vmem:[%s1346_s6 + $0x10] sm:$0xff]  ;;  %v625_v17 = vld [vmem:[%s315_s24] sm:$0xff] }
 0x13e   : > { %785 = vmatpush.bf16.msra.mxu3 %v1042_v9  ;;  %765 = vmatpush.bf16.msra.mxu2 %v1040_v11 }
 0x141   : > { %1072 = vrot.lane.b32.xlu1 %v1071_v18, %s1122_s18  ;;  %v626_v18 = vld [vmem:[%s315_s24 + $0x8] sm:$0xff] }
 0x142   : > { %766 = vmatpush.bf16.msra.mxu2 %v1039_v12 }
 0x146   : > { %767 = vmatpush.bf16.msra.mxu2 %v1038_v13 }
 0x1ab   : > { %v1068_v22 = vpop.permute.xlu1 %1067 }
 0x1ac   : > { %v1070_v23 = vunpack.i.h.bf16 %v1068_v22  ;;  %v1069_v24 = vunpack.i.l.bf16 %v1068_v22 }
 0x1ae   : > { %v511_v29 = vsel %vm366_vm4, %v487_v26, %v1069_v24  ;;  %v512_v30 = vsel %vm366_vm4, %v485_v14, %v1070_v23  ;;  %v1037_v14 = vld [vmem:[%s1346_s6 + $0x18] sm:$0xff] }
 0x1af   : > { %768 = vmatpush.bf16.msra.mxu2 %v1037_v14 }
 0x1b3   : > { %v1073_v25 = vpop.permute.xlu1 %1072  ;;  %769 = vmatpush.bf16.msra.mxu2 %v1036_v15 }
 0x1b4   : > { %v1075_v27 = vunpack.i.h.bf16 %v1073_v25  ;;  %v1074_v28 = vunpack.i.l.bf16 %v1073_v25 }
 0x1b6   : > { %v513_v31 = vsel %vm369_vm5, %v511_v29, %v1074_v28  ;;  %v514_v32 = vsel %vm369_vm5, %v512_v30, %v1075_v27 }
 0x1b7   : > { %v515_v33 = vpack.c.bf16 %v514_v32, %v513_v31  ;;  %770 = vmatpush.bf16.msra.mxu2 %v1035_v21 }
 0x1b9   : > { %963 = vmatmul.msk.bf16.vlgmr.msra.gmra.mxu1 %vm425_vm6, %v515_v33 }
 0x236   : > { %v580_v35 = vpop.f32.mrf.mxu1 }
 0x237   : > { %v581_v36 = vadd.f32 %v1087_v34, %v580_v35  ;;  %v1034_v35 = vld [vmem:[%s1346_s6] sm:$0xff] }
 0x238   : > { %771 = vmatpush.bf16.msra.mxu2 %v1034_v35 }
 0x239   : > { %v964_v37 = vmul.f32 -1.442695, %v581_v36 }
 0x23b   : > { %1097 = vpow2.f32 %v964_v37 }
 0x23e   : > { %v582_v38 = vpop.f32.mrf.mxu1 }
 0x23f   : > { %v583_v39 = vadd.f32 %v1087_v34, %v582_v38 }
 0x241   : > { %v1098_v40 = vpop.eup %1097  ;;  %v965_v41 = vmul.f32 -1.442695, %v583_v39 }
 0x242   : > { %v591_v43 = vadd.f32 1.0, %v1098_v40 }
 0x243   : > { %1099 = vpow2.f32 %v965_v41 }
 0x244   : > { %1101 = vrcp.f32 %v591_v43  ;;  %v604_v54 = vand.u32 2147483648, %v591_v43  ;;  %vm598_vm6 = vweird.f32 %v591_v43  ;;  %v602_v55 = vand.u32 2147483647, %v591_v43 }
 0x246   : > { %v605_v61 = vor.u32 1.1754944e-38, %v604_v54  ;;  %vm603_vm9 = vcmp.eq.f32.partialorder %v602_v55, 8.507059e+37 }
 0x249   : > { %v1100_v45 = vpop.eup %1099 }
 0x24a   : > { %v1102_v46 = vpop.eup %1101  ;;  %v592_v47 = vadd.f32 1.0, %v1100_v45 }
 0x24b   : > { %v594_v48 = vmul.f32 %v1102_v46, %v591_v43  ;;  %vm599_vm15 = vweird.f32 %v1102_v46 }
 0x24c   : > { %1103 = vrcp.f32 %v592_v47  ;;  %vm600_vm7 = vmor %vm598_vm6, %vm599_vm15  ;;  %v619_v57 = vand.u32 2147483648, %v592_v47  ;;  %v617_v60 = vand.u32 2147483647, %v592_v47  ;;  %vm613_vm10 = vweird.f32 %v592_v47 }
 0x24d   : > { %v595_v49 = vsub.f32 1.0, %v594_v48 }
 0x24e   : > { %v620_v0 = vor.u32 1.1754944e-38, %v619_v57  ;;  %vm618_vm12 = vcmp.eq.f32.partialorder %v617_v60, 8.507059e+37 }
 0x24f   : > { %v596_v50 = vmul.f32 %v1102_v46, %v595_v49 }
 0x251   : > { %v597_v52 = vadd.f32 %v1102_v46, %v596_v50 }
 0x252   : > { %v1104_v51 = vpop.eup %1103 }
 0x253   : > { %v609_v53 = vmul.f32 %v1104_v51, %v592_v47  ;;  %v601_v58 = vsel %vm600_vm7, %v1102_v46, %v597_v52  ;;  %vm614_vm8 = vweird.f32 %v1104_v51 }
 0x254   : > { %v606_v63 = vsel %vm603_vm9, %v605_v61, %v601_v58  ;;  %vm615_vm11 = vmor %vm613_vm10, %vm614_vm8 }
 0x255   : > { %v610_v56 = vsub.f32 1.0, %v609_v53  ;;  %v623_v5 = vmul.f32 %v606_v63, %v581_v36 }
 0x257   : > { %v611_v59 = vmul.f32 %v1104_v51, %v610_v56 }
 0x259   : > { %v612_v62 = vadd.f32 %v1104_v51, %v611_v59 }
 0x25b   : > { %v616_v1 = vsel %vm615_vm11, %v1104_v51, %v612_v62 }
 0x25c   : > { %v621_v3 = vsel %vm618_vm12, %v620_v0, %v616_v1 }
 0x25d   : > { %v624_v6 = vmul.f32 %v621_v3, %v583_v39 }
 0x25f   : > { %v1076_v7 = vpack.i.bf16 %v624_v6, %v623_v5 }
 0x261   : > { %1077 = vrot.lane.b32.xlu2 %v1076_v7, %s1121_s17 }
 0x2bb   : > { %v1078_v16 = vpop.permute.xlu2 %1077 }
 0x2bc   : > { %v1080_v19 = vunpack.i.h.bf16 %v1078_v16  ;;  %v1079_v20 = vunpack.i.l.bf16 %v1078_v16 }
 0x2be   : > { %v635_v22 = vsel %vm366_vm4, %v625_v17, %v1079_v20  ;;  %v636_v23 = vsel %vm366_vm4, %v626_v18, %v1080_v19 }
 0x2bf   : > { %v638_v24 = vrot.slane %v636_v23, 7  ;;  %v644_v25 = vrot.slane %v636_v23, 1  ;;  %v1081_v26 = vpack.i.bf16 %v636_v23, %v635_v22  ;;  %v637_v27 = vrot.slane %v635_v22, 7 }
 0x2c0   : > { %v643_v28 = vrot.slane %v635_v22, 1 }
 0x2c1   : > { %1082 = vrot.lane.b32.xlu2 %v1081_v26, %s1122_s18  ;;  %v639_v29 = vsel %vm338_vm2, %v637_v27, %v638_v24  ;;  %v640_v30 = vsel %vm338_vm2, %v638_v24, %v637_v27 }
 0x2c2   : > { %v645_v31 = vsel %vm345_vm0, %v643_v28, %v644_v25  ;;  %v646_v32 = vsel %vm345_vm0, %v644_v25, %v643_v28  ;;  %v641_v39 = vsel %vm330_vm3, 0.0, %v640_v30 }
 0x2c3   : > { %v648_v33 = vsel %vm333_vm1, 0.0, %v646_v32 }
 0x2c4   : > { %v660_v34 = vpack.c.bf16 %v648_v33, %v645_v31 }
 0x2c6   : > { %1014 = vmatmul.msk.bf16.vlgmr.msra.gmra.mxu3 %vm369_vm5, %v660_v34 }
 0x31b   : > { %v1083_v36 = vpop.permute.xlu2 %1082 }
 0x31c   : > { %v1085_v37 = vunpack.i.h.bf16 %v1083_v36  ;;  %v1084_v38 = vunpack.i.l.bf16 %v1083_v36 }
 0x31e   : > { %v657_v40 = vsel %vm369_vm5, %v641_v39, %v1084_v38  ;;  %v658_v41 = vsel %vm369_vm5, %v639_v29, %v1085_v37 }
 0x31f   : > { %v659_v4 = vpack.c.bf16 %v658_v41, %v657_v40 }
 0x321   : > { %772 = vmatmul.bf16.vlgmr.msra.gmra.mxu2 %v659_v4 }
 0x349   : > { %v787_v43 = vpop.f32.mrf.mxu3 }
 0x351   : > { %v789_v2 = vpop.f32.mrf.mxu3 }
 0x3a4   : > { %v773_v44 = vpop.f32.mrf.mxu2 }
 0x3a5   : > { %v774_v45 = vadd.f32 %v1088_v42, %v773_v44 }
 0x3a7   : > { %v788_v46 = vadd.f32 %v787_v43, %v774_v45 }
 0x3a9   : > { %v1015_v47 = vmul.f32 -1.442695, %v788_v46 }
 0x3ab   : > { %1105 = vpow2.f32 %v1015_v47 }
 0x3ac   : > { %v775_v48 = vpop.f32.mrf.mxu2 }
 0x3ad   : > { %v776_v49 = vadd.f32 %v1088_v42, %v775_v48 }
 0x3af   : > { %v790_v50 = vadd.f32 %v789_v2, %v776_v49 }
 0x3b1   : > { %v1106_v51 = vpop.eup %1105  ;;  %v1016_v52 = vmul.f32 -1.442695, %v790_v50 }
 0x3b2   : > { %v798_v53 = vadd.f32 1.0, %v1106_v51 }
 0x3b3   : > { %1107 = vpow2.f32 %v1016_v52 }
 0x3b4   : > { %1109 = vrcp.f32 %v798_v53  ;;  %v811_v59 = vand.u32 2147483648, %v798_v53  ;;  %v809_v61 = vand.u32 2147483647, %v798_v53  ;;  %vm805_vm1 = vweird.f32 %v798_v53 }
 0x3b6   : > { %v812_v0 = vor.u32 1.1754944e-38, %v811_v59  ;;  %vm810_vm3 = vcmp.eq.f32.partialorder %v809_v61, 8.507059e+37 }
 0x3b9   : > { %v1108_v54 = vpop.eup %1107 }
 0x3ba   : > { %v1110_v55 = vpop.eup %1109  ;;  %v799_v56 = vadd.f32 1.0, %v1108_v54 }
 0x3bb   : > { %v801_v57 = vmul.f32 %v1110_v55, %v798_v53  ;;  %vm806_vm0 = vweird.f32 %v1110_v55 }
 0x3bc   : > { %1111 = vrcp.f32 %v799_v56  ;;  %vm807_vm2 = vmor %vm805_vm1, %vm806_vm0  ;;  %v826_v8 = vand.u32 2147483648, %v799_v56  ;;  %v824_v10 = vand.u32 2147483647, %v799_v56  ;;  %vm820_vm5 = vweird.f32 %v799_v56 }
 0x3bd   : > { %v802_v58 = vsub.f32 1.0, %v801_v57 }
 0x3be   : > { %v827_v12 = vor.u32 1.1754944e-38, %v826_v8  ;;  %vm825_vm14 = vcmp.eq.f32.partialorder %v824_v10, 8.507059e+37 }
 0x3bf   : > { %v803_v60 = vmul.f32 %v1110_v55, %v802_v58 }
 0x3c1   : > { %v804_v62 = vadd.f32 %v1110_v55, %v803_v60 }
 0x3c2   : > { %v1112_v63 = vpop.eup %1111 }
 0x3c3   : > { %v808_v1 = vsel %vm807_vm2, %v1110_v55, %v804_v62  ;;  %v816_v3 = vmul.f32 %v1112_v63, %v799_v56  ;;  %vm821_vm4 = vweird.f32 %v1112_v63 }
 0x3c4   : > { %v813_v5 = vsel %vm810_vm3, %v812_v0, %v808_v1  ;;  %vm822_vm13 = vmor %vm820_vm5, %vm821_vm4 }
 0x3c5   : > { %v830_v6 = vmul.f32 %v813_v5, %v788_v46  ;;  %v817_v7 = vsub.f32 1.0, %v816_v3 }
 0x3c7   : > { %832 = vst [vmem:[%s325_s14] sm:$0xff] %v830_v6  ;;  %v818_v9 = vmul.f32 %v1112_v63, %v817_v7 }
 0x3c9   : > { %v819_v11 = vadd.f32 %v1112_v63, %v818_v9 }
 0x3cb   : > { %v823_v13 = vsel %vm822_vm13, %v1112_v63, %v819_v11 }
 0x3cc   : > { %v828_v14 = vsel %vm825_vm14, %v827_v12, %v823_v13 }
 0x3cd   : > { %v831_v15 = vmul.f32 %v828_v14, %v790_v50 }
 0x3cf   : > { %833 = vst [vmem:[%s325_s14 + $0x8] sm:$0xff] %v831_v15 }
 0x3d0 PF: > { %s18_s27 = sadd.s32 1, %s1119_s27  }
 0x3d1   : > { %p15_p4 = scmp.ge.s32.totalorder %s18_s27, 4  }
 0x3d3   :  { %17 = sbr.rel (!%p15_p4) target bundleno = 1 (0x1), region = 85 }

</bundles_post_ra>
